<compile_context>
chip_gen: v7x
topology: tpu7x:2x2x1
jax: 0.10.0
libtpu: 0.0.40
codegen_flags: <defaults>
</compile_context>

<pallas_src>
import functools

import jax
import jax.numpy as jnp
from jax.experimental import pallas as pl
from jax.experimental.pallas import tpu as pltpu


def _round_up(n, m):
    return ((n + m - 1) // m) * m


def classifier_kernel(x_ref, w1_ref, b1_ref, w2_ref, b2_ref, wc_ref, bc_ref,
                      out_ref):
    """One batch tile of the fused 3-matmul MLP.

    x_ref  : [TM, 512] bf16 (pipelined over the batch grid)
    w1_ref : [512, 512] bf16 , b1_ref: [1, 512] f32
    w2_ref : [512, 256] bf16 , b2_ref: [1, 256] f32
    wc_ref : [256, 8]  bf16 combined head  [w3 | w3 @ w4 | 0-pad]
    bc_ref : [1, 8]    f32  combined bias  [b3 | b3 @ w4 + b4 | 0-pad]
    out_ref: [TM, 8]   f32  -> cols 0:2 = feat, cols 2:7 = logits
    """
    x = x_ref[...]

    # centerLoss: Linear(512, 512) + ReLU   (Dropout == identity in eval)
    h1 = jnp.dot(x, w1_ref[...], preferred_element_type=jnp.float32) + b1_ref[...]
    h1 = jnp.maximum(h1, 0.0).astype(jnp.bfloat16)

    # centerLoss: Linear(512, 256) + ReLU
    h2 = jnp.dot(h1, w2_ref[...], preferred_element_type=jnp.float32) + b2_ref[...]
    h2 = jnp.maximum(h2, 0.0).astype(jnp.bfloat16)

    # Fused heads: [feat | logits] = h2 @ [w3 | w3@w4] + [b3 | b3@w4+b4]
    head = jnp.dot(h2, wc_ref[...], preferred_element_type=jnp.float32) + bc_ref[...]
    out_ref[...] = head.astype(out_ref.dtype)


@functools.partial(jax.jit, static_argnames=("tm",))
def classifier_forward(x, params, *, tm=512):
    """x: [B, 512] float32.  params: (in,out)-shaped weights + (1,out) biases.

    Returns (feat [B, 2], logits [B, 5]) in float32.
    """
    B = x.shape[0]
    TM = min(tm, _round_up(B, 8))      # 8-sublane aligned batch tile
    Bp = _round_up(B, TM)

    # bf16 dot operands (f32 accumulation inside the kernel); pad batch to Bp.
    x_bf = x.astype(jnp.bfloat16)
    if Bp != B:
        x_bf = jnp.pad(x_bf, ((0, Bp - B), (0, 0)))

    w1 = params["w1"].astype(jnp.bfloat16)
    b1 = params["b1"].astype(jnp.float32)
    w2 = params["w2"].astype(jnp.bfloat16)
    b2 = params["b2"].astype(jnp.float32)

    # Fold Linear(256->2) and Linear(2->5) into one [256, 7] matmul, padded to
    # a lane-friendlier width of 8 (single output slab, no second skinny dot).
    w3, b3 = params["w3"], params["b3"]
    w4, b4 = params["w4"], params["b4"]
    w_comb = jnp.concatenate([w3, w3 @ w4], axis=1)            # [256, 7]
    b_comb = jnp.concatenate([b3, b3 @ w4 + b4], axis=1)       # [1, 7]
    w_comb = jnp.pad(w_comb, ((0, 0), (0, 1))).astype(jnp.bfloat16)  # [256, 8]
    b_comb = jnp.pad(b_comb, ((0, 0), (0, 1))).astype(jnp.float32)   # [1, 8]

    grid = (Bp // TM,)
    const = lambda i: (0, 0)           # weights/biases stay VMEM-resident

    flops = 2 * Bp * (512 * 512 + 512 * 256 + 256 * 8)
    bytes_accessed = (Bp * 512 * 2 + Bp * 8 * 4                # x in, out slab
                      + (512 * 512 + 512 * 256 + 256 * 8) * 2  # bf16 weights
                      + (512 + 256 + 8) * 4)                   # f32 biases

    out = pl.pallas_call(
        classifier_kernel,
        out_shape=jax.ShapeDtypeStruct((Bp, 8), jnp.float32),
        grid=grid,
        in_specs=[
            pl.BlockSpec((TM, 512), lambda i: (i, 0)),   # x tile (pipelined)
            pl.BlockSpec((512, 512), const),             # w1
            pl.BlockSpec((1, 512), const),               # b1
            pl.BlockSpec((512, 256), const),             # w2
            pl.BlockSpec((1, 256), const),               # b2
            pl.BlockSpec((256, 8), const),               # combined head weight
            pl.BlockSpec((1, 8), const),                 # combined head bias
        ],
        out_specs=pl.BlockSpec((TM, 8), lambda i: (i, 0)),
        compiler_params=pltpu.CompilerParams(
            dimension_semantics=("parallel",)),
        cost_estimate=pl.CostEstimate(
            flops=flops, transcendentals=0, bytes_accessed=bytes_accessed),
    )(x_bf, w1, b1, w2, b2, w_comb, b_comb)

    feat = out[:B, 0:2]
    logits = out[:B, 2:7]
    return feat, logits


def init_params(key):
    """Deterministic synthetic init; weights stored as (in, out) = W_pt.T."""
    ks = jax.random.split(key, 8)

    def lin(kw, kb, fan_in, fan_out):
        bound = 1.0 / jnp.sqrt(jnp.float32(fan_in))
        w = jax.random.uniform(kw, (fan_in, fan_out), jnp.float32, -bound, bound)
        b = jax.random.uniform(kb, (1, fan_out), jnp.float32, -bound, bound)
        return w, b

    w1, b1 = lin(ks[0], ks[1], 512, 512)
    w2, b2 = lin(ks[2], ks[3], 512, 256)
    w3, b3 = lin(ks[4], ks[5], 256, 2)
    w4, b4 = lin(ks[6], ks[7], 2, 5)
    return {"w1": w1, "b1": b1, "w2": w2, "b2": b2,
            "w3": w3, "b3": b3, "w4": w4, "b4": b4}


def reference_forward(x, p):
    """Pure-JAX reference of the PyTorch eval-mode forward (unfused heads)."""
    h = jnp.maximum(x @ p["w1"] + p["b1"], 0.0)
    h = jnp.maximum(h @ p["w2"] + p["b2"], 0.0)
    feat = h @ p["w3"] + p["b3"]
    logits = feat @ p["w4"] + p["b4"]
    return feat, logits


if __name__ == "__main__":
    key = jax.random.PRNGKey(0)
    k_x, k_p = jax.random.split(key)

    B = 8
    x = jax.random.normal(k_x, (B, 512), dtype=jnp.float32)
    params = init_params(k_p)

    feat, logits = classifier_forward(x, params)
    jax.block_until_ready((feat, logits))

    feat_ref, logits_ref = reference_forward(x, params)
    assert feat.shape == (B, 2) and logits.shape == (B, 5)
    # bf16 matmul inputs (f32 accumulation) + head-fusion reassociation
    # -> compare at bf16-appropriate tolerances.
    assert jnp.allclose(feat, feat_ref, atol=5e-2, rtol=5e-2), (
        float(jnp.max(jnp.abs(feat - feat_ref))))
    assert jnp.allclose(logits, logits_ref, atol=5e-2, rtol=5e-2), (
        float(jnp.max(jnp.abs(logits - logits_ref))))

    print("KERNEL_OK")
</pallas_src>

<mosaic_0001>
module attributes {stable_mosaic.version = 11 : i64} {
  func.func @classifier_kernel(%arg0: i32, %arg1: memref<8x512xbf16, #tpu.memory_space<vmem>>, %arg2: memref<512x512xbf16, #tpu.memory_space<vmem>>, %arg3: memref<1x512xf32, #tpu.memory_space<vmem>>, %arg4: memref<512x256xbf16, #tpu.memory_space<vmem>>, %arg5: memref<1x256xf32, #tpu.memory_space<vmem>>, %arg6: memref<256x8xbf16, #tpu.memory_space<vmem>>, %arg7: memref<1x8xf32, #tpu.memory_space<vmem>>, %arg8: memref<8x8xf32, #tpu.memory_space<vmem>>) attributes {dimension_semantics = [#tpu.dimension_semantics<parallel>], iteration_bounds = array<i64: 1>, scalar_prefetch = 0 : i64, scratch_operands = 0 : i64, tpu.core_type = #tpu.core_type<tc>, window_params = [{transform_indices = @transform_0, window_bounds = array<i64: 8, 512>}, {pipeline_mode = #tpu.pipeline_mode<synchronous>, transform_indices = @transform_1, window_bounds = array<i64: 512, 512>}, {pipeline_mode = #tpu.pipeline_mode<synchronous>, transform_indices = @transform_2, window_bounds = array<i64: 1, 512>}, {pipeline_mode = #tpu.pipeline_mode<synchronous>, transform_indices = @transform_3, window_bounds = array<i64: 512, 256>}, {pipeline_mode = #tpu.pipeline_mode<synchronous>, transform_indices = @transform_4, window_bounds = array<i64: 1, 256>}, {pipeline_mode = #tpu.pipeline_mode<synchronous>, transform_indices = @transform_5, window_bounds = array<i64: 256, 8>}, {pipeline_mode = #tpu.pipeline_mode<synchronous>, transform_indices = @transform_6, window_bounds = array<i64: 1, 8>}, {transform_indices = @transform_7, window_bounds = array<i64: 8, 8>}]} {
    %c0 = arith.constant 0 : index
    %c0_0 = arith.constant 0 : index
    %0 = vector.load %arg1[%c0, %c0_0] : memref<8x512xbf16, #tpu.memory_space<vmem>>, vector<8x512xbf16>
    %c0_1 = arith.constant 0 : index
    %c0_2 = arith.constant 0 : index
    %1 = vector.load %arg2[%c0_1, %c0_2] : memref<512x512xbf16, #tpu.memory_space<vmem>>, vector<512x512xbf16>
    %cst = arith.constant dense<0.000000e+00> : vector<8x512xf32>
    %2 = tpu.matmul %0, %1, %cst {dimension_numbers = #tpu.dot_dimension_numbers<[1], [0], [0], [1], [0, 0, 1, 1], [], []>} : vector<8x512xbf16>, vector<512x512xbf16>, vector<8x512xf32> -> vector<8x512xf32>
    %c0_3 = arith.constant 0 : index
    %c0_4 = arith.constant 0 : index
    %3 = vector.load %arg3[%c0_3, %c0_4] : memref<1x512xf32, #tpu.memory_space<vmem>>, vector<1x512xf32>
    %4 = vector.broadcast %3 : vector<1x512xf32> to vector<8x512xf32>
    %5 = arith.addf %2, %4 : vector<8x512xf32>
    %cst_5 = arith.constant 0.000000e+00 : f32
    %6 = vector.broadcast %cst_5 : f32 to vector<8x512xf32>
    %7 = arith.maximumf %5, %6 : vector<8x512xf32>
    %8 = arith.truncf %7 : vector<8x512xf32> to vector<8x512xbf16>
    %c0_6 = arith.constant 0 : index
    %c0_7 = arith.constant 0 : index
    %9 = vector.load %arg4[%c0_6, %c0_7] : memref<512x256xbf16, #tpu.memory_space<vmem>>, vector<512x256xbf16>
    %cst_8 = arith.constant dense<0.000000e+00> : vector<8x256xf32>
    %10 = tpu.matmul %8, %9, %cst_8 {dimension_numbers = #tpu.dot_dimension_numbers<[1], [0], [0], [1], [0, 0, 1, 1], [], []>} : vector<8x512xbf16>, vector<512x256xbf16>, vector<8x256xf32> -> vector<8x256xf32>
    %c0_9 = arith.constant 0 : index
    %c0_10 = arith.constant 0 : index
    %11 = vector.load %arg5[%c0_9, %c0_10] : memref<1x256xf32, #tpu.memory_space<vmem>>, vector<1x256xf32>
    %12 = vector.broadcast %11 : vector<1x256xf32> to vector<8x256xf32>
    %13 = arith.addf %10, %12 : vector<8x256xf32>
    %cst_11 = arith.constant 0.000000e+00 : f32
    %14 = vector.broadcast %cst_11 : f32 to vector<8x256xf32>
    %15 = arith.maximumf %13, %14 : vector<8x256xf32>
    %16 = arith.truncf %15 : vector<8x256xf32> to vector<8x256xbf16>
    %c0_12 = arith.constant 0 : index
    %c0_13 = arith.constant 0 : index
    %17 = vector.load %arg6[%c0_12, %c0_13] : memref<256x8xbf16, #tpu.memory_space<vmem>>, vector<256x8xbf16>
    %cst_14 = arith.constant dense<0.000000e+00> : vector<8x8xf32>
    %18 = tpu.matmul %16, %17, %cst_14 {dimension_numbers = #tpu.dot_dimension_numbers<[1], [0], [0], [1], [0, 0, 1, 1], [], []>} : vector<8x256xbf16>, vector<256x8xbf16>, vector<8x8xf32> -> vector<8x8xf32>
    %c0_15 = arith.constant 0 : index
    %c0_16 = arith.constant 0 : index
    %19 = vector.load %arg7[%c0_15, %c0_16] : memref<1x8xf32, #tpu.memory_space<vmem>>, vector<1x8xf32>
    %20 = vector.broadcast %19 : vector<1x8xf32> to vector<8x8xf32>
    %21 = arith.addf %18, %20 : vector<8x8xf32>
    %c0_17 = arith.constant 0 : index
    %c0_18 = arith.constant 0 : index
    %22 = vector.load %arg8[%c0_17, %c0_18] : memref<8x8xf32, #tpu.memory_space<vmem>>, vector<8x8xf32>
    tpu.vector_store %arg8[%c0_17, %c0_18], %21 {strides = array<i32>} : memref<8x8xf32, #tpu.memory_space<vmem>>, vector<8x8xf32>,
    return
  }
  func.func @transform_0(%arg0: i32) -> (i32, i32) {
    %c0_i32 = arith.constant 0 : i32
    %c0_i32_0 = arith.constant 0 : i32
    return %arg0, %c0_i32 : i32, i32
  }
  func.func @transform_1(%arg0: i32) -> (i32, i32) {
    %c0_i32 = arith.constant 0 : i32
    %c0_i32_0 = arith.constant 0 : i32
    %c0_i32_1 = arith.constant 0 : i32
    return %c0_i32, %c0_i32_0 : i32, i32
  }
  func.func @transform_2(%arg0: i32) -> (i32, i32) {
    %c0_i32 = arith.constant 0 : i32
    %c0_i32_0 = arith.constant 0 : i32
    %c0_i32_1 = arith.constant 0 : i32
    return %c0_i32, %c0_i32_0 : i32, i32
  }
  func.func @transform_3(%arg0: i32) -> (i32, i32) {
    %c0_i32 = arith.constant 0 : i32
    %c0_i32_0 = arith.constant 0 : i32
    %c0_i32_1 = arith.constant 0 : i32
    return %c0_i32, %c0_i32_0 : i32, i32
  }
  func.func @transform_4(%arg0: i32) -> (i32, i32) {
    %c0_i32 = arith.constant 0 : i32
    %c0_i32_0 = arith.constant 0 : i32
    %c0_i32_1 = arith.constant 0 : i32
    return %c0_i32, %c0_i32_0 : i32, i32
  }
  func.func @transform_5(%arg0: i32) -> (i32, i32) {
    %c0_i32 = arith.constant 0 : i32
    %c0_i32_0 = arith.constant 0 : i32
    %c0_i32_1 = arith.constant 0 : i32
    return %c0_i32, %c0_i32_0 : i32, i32
  }
  func.func @transform_6(%arg0: i32) -> (i32, i32) {
    %c0_i32 = arith.constant 0 : i32
    %c0_i32_0 = arith.constant 0 : i32
    %c0_i32_1 = arith.constant 0 : i32
    return %c0_i32, %c0_i32_0 : i32, i32
  }
  func.func @transform_7(%arg0: i32) -> (i32, i32) {
    %c0_i32 = arith.constant 0 : i32
    %c0_i32_0 = arith.constant 0 : i32
    return %arg0, %c0_i32 : i32, i32
  }
}

</mosaic_0001>

<bundles_post_ra>
// kernel: classifier_forward.1
= control target key start
LH: loop header
LB: loop body
LE: loop exit
PB: predicated region body
PF: predicated region fallthrough
CT: control target
= control target key end

     0   :  { %vm1662_vm0 = vcmask 64512   ;;  %s2941_s1 = inlined_call_operand.vmem [shape: bf16[512,512], index: 1, kind: input, shape index: {}]   ;;  %s2942_s0 = inlined_call_operand.vmem [shape: bf16[8,512], index: 0, kind: input, shape index: {}]   ;;  %s2943_s3 = inlined_call_operand.vmem [shape: bf16[512,256], index: 3, kind: input, shape index: {}]   ;;  %s2944_s2 = inlined_call_operand.vmem [shape: f32[1,512], index: 2, kind: input, shape index: {}]   ;;  %s2945_s5 = inlined_call_operand.vmem [shape: bf16[256,8], index: 5, kind: input, shape index: {}]   ;;  %s2946_s4 = inlined_call_operand.vmem [shape: f32[1,256], index: 4, kind: input, shape index: {}]   ;;  %s2947_s6 = inlined_call_operand.vmem [shape: f32[1,8], index: 6, kind: input, shape index: {}]   ;;  %s2948_s7 = inlined_call_operand.vmem [shape: f32[8,8], index: 7, kind: output, shape index: {}]  }
   0x1   :  { %v1919_v0 = vld [vmem:[%s2941_s1 + $0x4] ss:$16 sps:$4 sm:$0xff]   ;;  %v1921_v1 = vld [vmem:[%s2941_s1] ss:$16 sps:$4 sm:$0xff]   ;;  %v28_v50 = vld [vmem:[%s2942_s0 + $0x8] sm:$0xff] }
   0x2   :  { %833 = vmatprep.subr.bf16.mxu1 %v1919_v0  ;;  %v1922_v2 = vld [vmem:[%s2941_s1 + $0x204] ss:$16 sps:$4 sm:$0xff]   ;;  %v1924_v3 = vld [vmem:[%s2941_s1 + $0x200] ss:$16 sps:$4 sm:$0xff]   ;;  %v2420_v52 = vcombine.high %v28_v50, %v28_v50 }
   0x3   :  { %834 = vmatpush1.bf16.msra.mxu1 %v1921_v1  ;;  %v1925_v4 = vld [vmem:[%s2941_s1 + $0x24] ss:$16 sps:$4 sm:$0xff]   ;;  %v1927_v5 = vld [vmem:[%s2941_s1 + $0x20] ss:$16 sps:$4 sm:$0xff]   ;;  %874 = vmatprep.subr.bf16.mxu0 %v1922_v2 }
   0x4   :  { %v1928_v6 = vld [vmem:[%s2941_s1 + $0x224] ss:$16 sps:$4 sm:$0xff]   ;;  %875 = vmatpush1.bf16.msra.mxu0 %v1924_v3  ;;  %835 = vmatprep.subr.bf16.mxu1 %v1925_v4  ;;  %v1930_v7 = vld [vmem:[%s2941_s1 + $0x220] ss:$16 sps:$4 sm:$0xff]   ;;  %v2019_v3 = vld [vmem:[%s2941_s1 + $0xc] ss:$16 sps:$4 sm:$0xff]  }
   0x5   :  { %876 = vmatprep.subr.bf16.mxu0 %v1928_v6  ;;  %v1931_v8 = vld [vmem:[%s2941_s1 + $0x44] ss:$16 sps:$4 sm:$0xff]   ;;  %v1933_v9 = vld [vmem:[%s2941_s1 + $0x40] ss:$16 sps:$4 sm:$0xff]   ;;  %906 = vmatprep.mubr.bf16.mxu0 %v2420_v52  ;;  %v2017_v6 = vld [vmem:[%s2941_s1 + $0x8] ss:$16 sps:$4 sm:$0xff]  }
   0x6   :  { %v1934_v10 = vld [vmem:[%s2941_s1 + $0x244] ss:$16 sps:$4 sm:$0xff]   ;;  %v1936_v12 = vld [vmem:[%s2941_s1 + $0x240] ss:$16 sps:$4 sm:$0xff]  }
   0x7   :  { %836 = vmatpush1.bf16.msra.mxu1 %v1927_v5  ;;  %v1937_v11 = vld [vmem:[%s2941_s1 + $0x64] ss:$16 sps:$4 sm:$0xff]   ;;  %v1939_v14 = vld [vmem:[%s2941_s1 + $0x60] ss:$16 sps:$4 sm:$0xff]  }
   0x8   :  { %837 = vmatprep.subr.bf16.mxu1 %v1931_v8  ;;  %877 = vmatpush1.bf16.msra.mxu0 %v1930_v7  ;;  %v1940_v13 = vld [vmem:[%s2941_s1 + $0x264] ss:$16 sps:$4 sm:$0xff]   ;;  %v1942_v16 = vld [vmem:[%s2941_s1 + $0x260] ss:$16 sps:$4 sm:$0xff]   ;;  %v2476_v7 = vcombine.low %v28_v50, %v28_v50  ;;  %v2024_v8 = vld [vmem:[%s2941_s1 + $0x2c] ss:$16 sps:$4 sm:$0xff]  }
   0x9   :  { %878 = vmatprep.subr.bf16.mxu0 %v1934_v10  ;;  %v1943_v15 = vld [vmem:[%s2941_s1 + $0x84] ss:$16 sps:$4 sm:$0xff]   ;;  %v1945_v18 = vld [vmem:[%s2941_s1 + $0x80] ss:$16 sps:$4 sm:$0xff]   ;;  %v2027_v10 = vld [vmem:[%s2941_s1 + $0x4c] ss:$16 sps:$4 sm:$0xff]  }
   0xa   :  { %v1946_v17 = vld [vmem:[%s2941_s1 + $0x284] ss:$16 sps:$4 sm:$0xff]   ;;  %v1948_v20 = vld [vmem:[%s2941_s1 + $0x280] ss:$16 sps:$4 sm:$0xff]  }
   0xb   :  { %838 = vmatpush1.bf16.msra.mxu1 %v1933_v9  ;;  %v1949_v19 = vld [vmem:[%s2941_s1 + $0xa4] ss:$16 sps:$4 sm:$0xff]   ;;  %v1951_v22 = vld [vmem:[%s2941_s1 + $0xa0] ss:$16 sps:$4 sm:$0xff]   ;;  %v2022_v9 = vld [vmem:[%s2941_s1 + $0x28] ss:$16 sps:$4 sm:$0xff]  }
   0xc   :  { %839 = vmatprep.subr.bf16.mxu1 %v1937_v11  ;;  %879 = vmatpush1.bf16.msra.mxu0 %v1936_v12  ;;  %v1952_v21 = vld [vmem:[%s2941_s1 + $0x2a4] ss:$16 sps:$4 sm:$0xff]   ;;  %v1954_v24 = vld [vmem:[%s2941_s1 + $0x2a0] ss:$16 sps:$4 sm:$0xff]   ;;  %v2025_v11 = vld [vmem:[%s2941_s1 + $0x48] ss:$16 sps:$4 sm:$0xff]  }
   0xd   :  { %880 = vmatprep.subr.bf16.mxu0 %v1940_v13  ;;  %v1955_v23 = vld [vmem:[%s2941_s1 + $0xc4] ss:$16 sps:$4 sm:$0xff]   ;;  %v1957_v26 = vld [vmem:[%s2941_s1 + $0xc0] ss:$16 sps:$4 sm:$0xff]   ;;  %v2030_v12 = vld [vmem:[%s2941_s1 + $0x6c] ss:$16 sps:$4 sm:$0xff]  }
   0xe   :  { %v1958_v25 = vld [vmem:[%s2941_s1 + $0x2c4] ss:$16 sps:$4 sm:$0xff]   ;;  %v1960_v28 = vld [vmem:[%s2941_s1 + $0x2c0] ss:$16 sps:$4 sm:$0xff]   ;;  %v2028_v13 = vld [vmem:[%s2941_s1 + $0x68] ss:$16 sps:$4 sm:$0xff]  }
   0xf   :  { %840 = vmatpush1.bf16.msra.mxu1 %v1939_v14  ;;  %v1961_v27 = vld [vmem:[%s2941_s1 + $0xe4] ss:$16 sps:$4 sm:$0xff]   ;;  %v1963_v30 = vld [vmem:[%s2941_s1 + $0xe0] ss:$16 sps:$4 sm:$0xff]   ;;  %v2033_v14 = vld [vmem:[%s2941_s1 + $0x8c] ss:$16 sps:$4 sm:$0xff]  }
  0x10   :  { %841 = vmatprep.subr.bf16.mxu1 %v1943_v15  ;;  %881 = vmatpush1.bf16.msra.mxu0 %v1942_v16  ;;  %v1964_v29 = vld [vmem:[%s2941_s1 + $0x2e4] ss:$16 sps:$4 sm:$0xff]   ;;  %v1966_v32 = vld [vmem:[%s2941_s1 + $0x2e0] ss:$16 sps:$4 sm:$0xff]   ;;  %v2031_v15 = vld [vmem:[%s2941_s1 + $0x88] ss:$16 sps:$4 sm:$0xff]  }
  0x11   :  { %882 = vmatprep.subr.bf16.mxu0 %v1946_v17  ;;  %v1967_v31 = vld [vmem:[%s2941_s1 + $0x104] ss:$16 sps:$4 sm:$0xff]   ;;  %v1969_v34 = vld [vmem:[%s2941_s1 + $0x100] ss:$16 sps:$4 sm:$0xff]   ;;  %v2036_v16 = vld [vmem:[%s2941_s1 + $0xac] ss:$16 sps:$4 sm:$0xff]  }
  0x12   :  { %v1970_v33 = vld [vmem:[%s2941_s1 + $0x304] ss:$16 sps:$4 sm:$0xff]   ;;  %v1972_v36 = vld [vmem:[%s2941_s1 + $0x300] ss:$16 sps:$4 sm:$0xff]   ;;  %v2034_v17 = vld [vmem:[%s2941_s1 + $0xa8] ss:$16 sps:$4 sm:$0xff]  }
  0x13   :  { %842 = vmatpush1.bf16.msra.mxu1 %v1945_v18  ;;  %v1973_v35 = vld [vmem:[%s2941_s1 + $0x124] ss:$16 sps:$4 sm:$0xff]   ;;  %v1975_v38 = vld [vmem:[%s2941_s1 + $0x120] ss:$16 sps:$4 sm:$0xff]   ;;  %v2039_v18 = vld [vmem:[%s2941_s1 + $0xcc] ss:$16 sps:$4 sm:$0xff]  }
  0x14   :  { %843 = vmatprep.subr.bf16.mxu1 %v1949_v19  ;;  %883 = vmatpush1.bf16.msra.mxu0 %v1948_v20  ;;  %v1976_v37 = vld [vmem:[%s2941_s1 + $0x324] ss:$16 sps:$4 sm:$0xff]   ;;  %v1978_v40 = vld [vmem:[%s2941_s1 + $0x320] ss:$16 sps:$4 sm:$0xff]   ;;  %v2037_v19 = vld [vmem:[%s2941_s1 + $0xc8] ss:$16 sps:$4 sm:$0xff]  }
  0x15   :  { %884 = vmatprep.subr.bf16.mxu0 %v1952_v21  ;;  %v1979_v39 = vld [vmem:[%s2941_s1 + $0x144] ss:$16 sps:$4 sm:$0xff]   ;;  %v1981_v42 = vld [vmem:[%s2941_s1 + $0x140] ss:$16 sps:$4 sm:$0xff]  }
  0x16   :  { %v1982_v41 = vld [vmem:[%s2941_s1 + $0x344] ss:$16 sps:$4 sm:$0xff]   ;;  %v1984_v44 = vld [vmem:[%s2941_s1 + $0x340] ss:$16 sps:$4 sm:$0xff]  }
  0x17   :  { %844 = vmatpush1.bf16.msra.mxu1 %v1951_v22  ;;  %v1985_v43 = vld [vmem:[%s2941_s1 + $0x164] ss:$16 sps:$4 sm:$0xff]   ;;  %v1987_v47 = vld [vmem:[%s2941_s1 + $0x160] ss:$16 sps:$4 sm:$0xff]   ;;  %v2042_v22 = vld [vmem:[%s2941_s1 + $0xec] ss:$16 sps:$4 sm:$0xff]  }
  0x18   :  { %845 = vmatprep.subr.bf16.mxu1 %v1955_v23  ;;  %885 = vmatpush1.bf16.msra.mxu0 %v1954_v24  ;;  %v1988_v45 = vld [vmem:[%s2941_s1 + $0x364] ss:$16 sps:$4 sm:$0xff]   ;;  %v1990_v51 = vld [vmem:[%s2941_s1 + $0x360] ss:$16 sps:$4 sm:$0xff]   ;;  %v2040_v24 = vld [vmem:[%s2941_s1 + $0xe8] ss:$16 sps:$4 sm:$0xff]  }
  0x19   :  { %886 = vmatprep.subr.bf16.mxu0 %v1958_v25  ;;  %v27_v46 = vld [vmem:[%s2942_s0] sm:$0xff]  ;;  %v2120_v23 = vld [vmem:[%s2943_s3 + $0x14] ss:$8 sps:$4 sm:$0xff]   ;;  %v2118_v25 = vld [vmem:[%s2943_s3 + $0x10] ss:$8 sps:$4 sm:$0xff]  }
  0x1a   :  { %v1669_v48 = vcombine.high %v27_v46, %v27_v46  ;;  %v1991_v49 = vld [vmem:[%s2941_s1 + $0x184] ss:$16 sps:$4 sm:$0xff]   ;;  %v1993_v54 = vld [vmem:[%s2941_s1 + $0x180] ss:$16 sps:$4 sm:$0xff]   ;;  %v2471_v5 = vcombine.low %v27_v46, %v27_v46 }
  0x1b   :  { %846 = vmatpush1.bf16.msra.mxu1 %v1957_v26  ;;  %v1994_v53 = vld [vmem:[%s2941_s1 + $0x384] ss:$16 sps:$4 sm:$0xff]   ;;  %v1996_v56 = vld [vmem:[%s2941_s1 + $0x380] ss:$16 sps:$4 sm:$0xff]  }
  0x1c   :  { %847 = vmatprep.subr.bf16.mxu1 %v1961_v27  ;;  %887 = vmatpush1.bf16.msra.mxu0 %v1960_v28  ;;  %v1997_v55 = vld [vmem:[%s2941_s1 + $0x1a4] ss:$16 sps:$4 sm:$0xff]   ;;  %v1999_v58 = vld [vmem:[%s2941_s1 + $0x1a0] ss:$16 sps:$4 sm:$0xff]   ;;  %v2045_v27 = vld [vmem:[%s2941_s1 + $0x10c] ss:$16 sps:$4 sm:$0xff]  }
  0x1d   :  { %888 = vmatprep.subr.bf16.mxu0 %v1964_v29  ;;  %865 = vmatprep.mubr.bf16.mxu1 %v1669_v48  ;;  %v2000_v57 = vld [vmem:[%s2941_s1 + $0x3a4] ss:$16 sps:$4 sm:$0xff]   ;;  %v2002_v60 = vld [vmem:[%s2941_s1 + $0x3a0] ss:$16 sps:$4 sm:$0xff]   ;;  %v2043_v28 = vld [vmem:[%s2941_s1 + $0x108] ss:$16 sps:$4 sm:$0xff]  }
  0x1e   :  { %v2003_v59 = vld [vmem:[%s2941_s1 + $0x1c4] ss:$16 sps:$4 sm:$0xff]   ;;  %v2005_v62 = vld [vmem:[%s2941_s1 + $0x1c0] ss:$16 sps:$4 sm:$0xff]  }
  0x1f   :  { %848 = vmatpush1.bf16.msra.mxu1 %v1963_v30  ;;  %v2006_v61 = vld [vmem:[%s2941_s1 + $0x3c4] ss:$16 sps:$4 sm:$0xff]   ;;  %v2008_v0 = vld [vmem:[%s2941_s1 + $0x3c0] ss:$16 sps:$4 sm:$0xff]  }
  0x20   :  { %849 = vmatprep.subr.bf16.mxu1 %v1967_v31  ;;  %889 = vmatpush1.bf16.msra.mxu0 %v1966_v32  ;;  %v2009_v63 = vld [vmem:[%s2941_s1 + $0x1e4] ss:$16 sps:$4 sm:$0xff]   ;;  %v2011_v2 = vld [vmem:[%s2941_s1 + $0x1e0] ss:$16 sps:$4 sm:$0xff]   ;;  %v2048_v31 = vld [vmem:[%s2941_s1 + $0x12c] ss:$16 sps:$4 sm:$0xff]  }
  0x21   :  { %890 = vmatprep.subr.bf16.mxu0 %v1970_v33  ;;  %v2012_v1 = vld [vmem:[%s2941_s1 + $0x3e4] ss:$16 sps:$4 sm:$0xff]   ;;  %v2016_v4 = vld [vmem:[%s2941_s1 + $0x3e0] ss:$16 sps:$4 sm:$0xff]   ;;  %v2046_v32 = vld [vmem:[%s2941_s1 + $0x128] ss:$16 sps:$4 sm:$0xff]  }
  0x22   :  { %v2115_v20 = vld [vmem:[%s2943_s3] ss:$8 sps:$4 sm:$0xff]   ;;  %v2117_v21 = vld [vmem:[%s2943_s3 + $0x4] ss:$8 sps:$4 sm:$0xff]   ;;  %v2126_v30 = vld [vmem:[%s2943_s3 + $0x34] ss:$8 sps:$4 sm:$0xff]  }
  0x23   :  { %850 = vmatpush1.bf16.msra.mxu1 %v1969_v34  ;;  %v2123_v26 = vld [vmem:[%s2943_s3 + $0x24] ss:$8 sps:$4 sm:$0xff]   ;;  %v2121_v29 = vld [vmem:[%s2943_s3 + $0x20] ss:$8 sps:$4 sm:$0xff]   ;;  %v2124_v33 = vld [vmem:[%s2943_s3 + $0x30] ss:$8 sps:$4 sm:$0xff]  }
  0x24   :  { %851 = vmatprep.subr.bf16.mxu1 %v1973_v35  ;;  %891 = vmatpush1.bf16.msra.mxu0 %v1972_v36  ;;  %v2129_v34 = vld [vmem:[%s2943_s3 + $0x44] ss:$8 sps:$4 sm:$0xff]   ;;  %v2049_v36 = vld [vmem:[%s2941_s1 + $0x148] ss:$16 sps:$4 sm:$0xff]   ;;  %v2138_v46 = vld [vmem:[%s2943_s3 + $0x74] ss:$8 sps:$4 sm:$0xff]  }
  0x25   :  { %892 = vmatprep.subr.bf16.mxu0 %v1976_v37  ;;  %v2051_v35 = vld [vmem:[%s2941_s1 + $0x14c] ss:$16 sps:$4 sm:$0xff]   ;;  %v2127_v37 = vld [vmem:[%s2943_s3 + $0x40] ss:$8 sps:$4 sm:$0xff]  }
  0x26   :  { %v2141_v50 = vld [vmem:[%s2943_s3 + $0x84] ss:$8 sps:$4 sm:$0xff]  }
  0x27   :  { %852 = vmatpush1.bf16.msra.mxu1 %v1975_v38  ;;  %v2132_v38 = vld [vmem:[%s2943_s3 + $0x54] ss:$8 sps:$4 sm:$0xff]  }
  0x28   :  { %853 = vmatprep.subr.bf16.mxu1 %v1979_v39  ;;  %893 = vmatpush1.bf16.msra.mxu0 %v1978_v40  ;;  %v2054_v39 = vld [vmem:[%s2941_s1 + $0x16c] ss:$16 sps:$4 sm:$0xff]   ;;  %v2130_v40 = vld [vmem:[%s2943_s3 + $0x50] ss:$8 sps:$4 sm:$0xff]  }
  0x29   :  { %894 = vmatprep.subr.bf16.mxu0 %v1982_v41  ;;  %v2052_v41 = vld [vmem:[%s2941_s1 + $0x168] ss:$16 sps:$4 sm:$0xff]  }
  0x2b   :  { %854 = vmatpush1.bf16.msra.mxu1 %v1981_v42  ;;  %v2135_v42 = vld [vmem:[%s2943_s3 + $0x64] ss:$8 sps:$4 sm:$0xff]  }
  0x2c   :  { %855 = vmatprep.subr.bf16.mxu1 %v1985_v43  ;;  %895 = vmatpush1.bf16.msra.mxu0 %v1984_v44  ;;  %v2057_v43 = vld [vmem:[%s2941_s1 + $0x18c] ss:$16 sps:$4 sm:$0xff]   ;;  %v2133_v44 = vld [vmem:[%s2943_s3 + $0x60] ss:$8 sps:$4 sm:$0xff]  }
  0x2d   :  { %896 = vmatprep.subr.bf16.mxu0 %v1988_v45  ;;  %v2055_v45 = vld [vmem:[%s2941_s1 + $0x188] ss:$16 sps:$4 sm:$0xff]  }
  0x2f   :  { %856 = vmatpush1.bf16.msra.mxu1 %v1987_v47  ;;  %v2060_v47 = vld [vmem:[%s2941_s1 + $0x1ac] ss:$16 sps:$4 sm:$0xff]  }
  0x30   :  { %857 = vmatprep.subr.bf16.mxu1 %v1991_v49  ;;  %897 = vmatpush1.bf16.msra.mxu0 %v1990_v51  ;;  %v2058_v49 = vld [vmem:[%s2941_s1 + $0x1a8] ss:$16 sps:$4 sm:$0xff]   ;;  %v2063_v51 = vld [vmem:[%s2941_s1 + $0x1cc] ss:$16 sps:$4 sm:$0xff]  }
  0x31   :  { %898 = vmatprep.subr.bf16.mxu0 %v1994_v53  ;;  %v2139_v53 = vld [vmem:[%s2943_s3 + $0x80] ss:$8 sps:$4 sm:$0xff]  }
  0x33   :  { %858 = vmatpush1.bf16.msra.mxu1 %v1993_v54  ;;  %v2061_v54 = vld [vmem:[%s2941_s1 + $0x1c8] ss:$16 sps:$4 sm:$0xff]  }
  0x34   :  { %859 = vmatprep.subr.bf16.mxu1 %v1997_v55  ;;  %899 = vmatpush1.bf16.msra.mxu0 %v1996_v56  ;;  %v2144_v55 = vld [vmem:[%s2943_s3 + $0x94] ss:$8 sps:$4 sm:$0xff]  }
  0x35   :  { %900 = vmatprep.subr.bf16.mxu0 %v2000_v57  ;;  %v2066_v56 = vld [vmem:[%s2941_s1 + $0x1ec] ss:$16 sps:$4 sm:$0xff]   ;;  %v2142_v57 = vld [vmem:[%s2943_s3 + $0x90] ss:$8 sps:$4 sm:$0xff]  }
  0x37   :  { %860 = vmatpush1.bf16.msra.mxu1 %v1999_v58  ;;  %v2064_v58 = vld [vmem:[%s2941_s1 + $0x1e8] ss:$16 sps:$4 sm:$0xff]  }
  0x38   :  { %861 = vmatprep.subr.bf16.mxu1 %v2003_v59  ;;  %901 = vmatpush1.bf16.msra.mxu0 %v2002_v60  ;;  %v2147_v59 = vld [vmem:[%s2943_s3 + $0xa4] ss:$8 sps:$4 sm:$0xff]  }
  0x39   :  { %902 = vmatprep.subr.bf16.mxu0 %v2006_v61  ;;  %v2069_v60 = vld [vmem:[%s2941_s1 + $0x20c] ss:$16 sps:$4 sm:$0xff]   ;;  %v2145_v61 = vld [vmem:[%s2943_s3 + $0xa0] ss:$8 sps:$4 sm:$0xff]  }
  0x3b   :  { %862 = vmatpush1.bf16.msra.mxu1 %v2005_v62  ;;  %v2067_v62 = vld [vmem:[%s2941_s1 + $0x208] ss:$16 sps:$4 sm:$0xff]  }
  0x3c   :  { %863 = vmatprep.subr.bf16.mxu1 %v2009_v63  ;;  %903 = vmatpush1.bf16.msra.mxu0 %v2008_v0  ;;  %v2072_v63 = vld [vmem:[%s2941_s1 + $0x22c] ss:$16 sps:$4 sm:$0xff]  }
  0x3d   :  { %904 = vmatprep.subr.bf16.mxu0 %v2012_v1  ;;  %v2150_v0 = vld [vmem:[%s2943_s3 + $0xb4] ss:$8 sps:$4 sm:$0xff]   ;;  %v2148_v1 = vld [vmem:[%s2943_s3 + $0xb0] ss:$8 sps:$4 sm:$0xff]  }
  0x3f   :  { %864 = vmatpush1.bf16.msra.mxu1 %v2011_v2  ;;  %v2070_v2 = vld [vmem:[%s2941_s1 + $0x228] ss:$16 sps:$4 sm:$0xff]  }
  0x40   :  { %915 = vmatprep.subr.bf16.mxu1 %v2019_v3  ;;  %905 = vmatpush1.bf16.msra.mxu0 %v2016_v4  ;;  %v2153_v3 = vld [vmem:[%s2943_s3 + $0xc4] ss:$8 sps:$4 sm:$0xff]  }
  0x41   :  { %1401 = vmatprep.subr.bf16.mxu0 %v2117_v21  ;;  %v2075_v4 = vld [vmem:[%s2941_s1 + $0x24c] ss:$16 sps:$4 sm:$0xff]   ;;  %v2088_v21 = vld [vmem:[%s2941_s1 + $0x2e8] ss:$16 sps:$4 sm:$0xff]  }
  0x42   :  { %866 = vmatmul.mubr.bf16.vlgmr.msra.gmra.mrb[0].mxu1 %v2471_v5 }
  0x43   :  { %916 = vmatpush1.bf16.msra.mxu1 %v2017_v6  ;;  %947 = vmatprep.mubr.bf16.mxu1 %v1669_v48  ;;  %v2136_v48 = vld [vmem:[%s2943_s3 + $0x70] ss:$8 sps:$4 sm:$0xff]   ;;  %v2156_v6 = vld [vmem:[%s2943_s3 + $0xd4] ss:$8 sps:$4 sm:$0xff]  }
  0x44   :  { %907 = vmatmul.mubr.bf16.vlgmr.msra.gmra.mrb[0].mxu0 %v2476_v7  ;;  %917 = vmatprep.subr.bf16.mxu1 %v2024_v8  ;;  %v2078_v8 = vld [vmem:[%s2941_s1 + $0x26c] ss:$16 sps:$4 sm:$0xff]  }
  0x45   :  { %1402 = vmatpush1.bf16.msra.mxu0 %v2115_v20  ;;  %v2162_v20 = vld [vmem:[%s2943_s3 + $0xf4] ss:$8 sps:$4 sm:$0xff]  }
  0x46   :  { %1403 = vmatprep.subr.bf16.mxu0 %v2120_v23  ;;  %v2093_v23 = vld [vmem:[%s2941_s1 + $0x30c] ss:$16 sps:$4 sm:$0xff]  }
  0x47   :  { %918 = vmatpush1.bf16.msra.mxu1 %v2022_v9  ;;  %v2154_v9 = vld [vmem:[%s2943_s3 + $0xd0] ss:$8 sps:$4 sm:$0xff]  }
  0x48   :  { %919 = vmatprep.subr.bf16.mxu1 %v2027_v10  ;;  %v2076_v10 = vld [vmem:[%s2941_s1 + $0x268] ss:$16 sps:$4 sm:$0xff]  }
  0x49   :  { %1404 = vmatpush1.bf16.msra.mxu0 %v2118_v25  ;;  %v2096_v25 = vld [vmem:[%s2941_s1 + $0x32c] ss:$16 sps:$4 sm:$0xff]  }
  0x4a   :  { %1405 = vmatprep.subr.bf16.mxu0 %v2123_v26  ;;  %v2165_v26 = vld [vmem:[%s2943_s3 + $0x104] ss:$8 sps:$4 sm:$0xff]  }
  0x4b   :  { %920 = vmatpush1.bf16.msra.mxu1 %v2025_v11  ;;  %v2081_v11 = vld [vmem:[%s2941_s1 + $0x28c] ss:$16 sps:$4 sm:$0xff]  }
  0x4c   :  { %921 = vmatprep.subr.bf16.mxu1 %v2030_v12  ;;  %v2079_v12 = vld [vmem:[%s2941_s1 + $0x288] ss:$16 sps:$4 sm:$0xff]  }
  0x4d   :  { %1406 = vmatpush1.bf16.msra.mxu0 %v2121_v29  ;;  %v2097_v29 = vld [vmem:[%s2941_s1 + $0x348] ss:$16 sps:$4 sm:$0xff]  }
  0x4e   :  { %1407 = vmatprep.subr.bf16.mxu0 %v2126_v30  ;;  %v2102_v30 = vld [vmem:[%s2941_s1 + $0x36c] ss:$16 sps:$4 sm:$0xff]  }
  0x4f   :  { %922 = vmatpush1.bf16.msra.mxu1 %v2028_v13  ;;  %v2084_v13 = vld [vmem:[%s2941_s1 + $0x2ac] ss:$16 sps:$4 sm:$0xff]  }
  0x50   :  { %923 = vmatprep.subr.bf16.mxu1 %v2033_v14  ;;  %v2082_v14 = vld [vmem:[%s2941_s1 + $0x2a8] ss:$16 sps:$4 sm:$0xff]  }
  0x51   :  { %1408 = vmatpush1.bf16.msra.mxu0 %v2124_v33  ;;  %v2103_v33 = vld [vmem:[%s2941_s1 + $0x388] ss:$16 sps:$4 sm:$0xff]  }
  0x52   :  { %1409 = vmatprep.subr.bf16.mxu0 %v2129_v34  ;;  %v2108_v34 = vld [vmem:[%s2941_s1 + $0x3ac] ss:$16 sps:$4 sm:$0xff]  }
  0x53   :  { %924 = vmatpush1.bf16.msra.mxu1 %v2031_v15  ;;  %v2087_v15 = vld [vmem:[%s2941_s1 + $0x2cc] ss:$16 sps:$4 sm:$0xff]  }
  0x54   :  { %925 = vmatprep.subr.bf16.mxu1 %v2036_v16  ;;  %v2159_v16 = vld [vmem:[%s2943_s3 + $0xe4] ss:$8 sps:$4 sm:$0xff]  }
  0x55   :  { %1410 = vmatpush1.bf16.msra.mxu0 %v2127_v37  ;;  %v2109_v37 = vld [vmem:[%s2941_s1 + $0x3c8] ss:$16 sps:$4 sm:$0xff]  }
  0x56   :  { %1411 = vmatprep.subr.bf16.mxu0 %v2132_v38  ;;  %v2114_v38 = vld [vmem:[%s2941_s1 + $0x3ec] ss:$16 sps:$4 sm:$0xff]  }
  0x57   :  { %926 = vmatpush1.bf16.msra.mxu1 %v2034_v17  ;;  %v2085_v17 = vld [vmem:[%s2941_s1 + $0x2c8] ss:$16 sps:$4 sm:$0xff]  }
  0x58   :  { %927 = vmatprep.subr.bf16.mxu1 %v2039_v18  ;;  %v2157_v18 = vld [vmem:[%s2943_s3 + $0xe0] ss:$8 sps:$4 sm:$0xff]  }
  0x59   :  { %1412 = vmatpush1.bf16.msra.mxu0 %v2130_v40  ;;  %v159_v40 = vlaneseq }
  0x5a   :  { %1413 = vmatprep.subr.bf16.mxu0 %v2135_v42 }
  0x5b   :  { %928 = vmatpush1.bf16.msra.mxu1 %v2037_v19  ;;  %v2090_v19 = vld [vmem:[%s2941_s1 + $0x2ec] ss:$16 sps:$4 sm:$0xff]  }
  0x5c   :  { %929 = vmatprep.subr.bf16.mxu1 %v2042_v22  ;;  %v2160_v22 = vld [vmem:[%s2943_s3 + $0xf0] ss:$8 sps:$4 sm:$0xff]  }
  0x5d   :  { %1414 = vmatpush1.bf16.msra.mxu0 %v2133_v44 }
  0x5e   :  { %1415 = vmatprep.subr.bf16.mxu0 %v2138_v46 }
  0x5f   :  { %930 = vmatpush1.bf16.msra.mxu1 %v2040_v24  ;;  %v2091_v24 = vld [vmem:[%s2941_s1 + $0x308] ss:$16 sps:$4 sm:$0xff]  }
  0x60   :  { %931 = vmatprep.subr.bf16.mxu1 %v2045_v27  ;;  %v2094_v27 = vld [vmem:[%s2941_s1 + $0x328] ss:$16 sps:$4 sm:$0xff]  }
  0x61   :  { %1416 = vmatpush1.bf16.msra.mxu0 %v2136_v48 }
  0x62   :  { %1417 = vmatprep.subr.bf16.mxu0 %v2141_v50 }
  0x63   :  { %932 = vmatpush1.bf16.msra.mxu1 %v2043_v28  ;;  %v2099_v28 = vld [vmem:[%s2941_s1 + $0x34c] ss:$16 sps:$4 sm:$0xff]  }
  0x64   :  { %933 = vmatprep.subr.bf16.mxu1 %v2048_v31  ;;  %v2100_v31 = vld [vmem:[%s2941_s1 + $0x368] ss:$16 sps:$4 sm:$0xff]  }
  0x65   :  { %1418 = vmatpush1.bf16.msra.mxu0 %v2139_v53 }
  0x66   :  { %1419 = vmatprep.subr.bf16.mxu0 %v2144_v55 }
  0x67   :  { %934 = vmatpush1.bf16.msra.mxu1 %v2046_v32  ;;  %v2105_v32 = vld [vmem:[%s2941_s1 + $0x38c] ss:$16 sps:$4 sm:$0xff]  }
  0x68   :  { %935 = vmatprep.subr.bf16.mxu1 %v2051_v35  ;;  %v2106_v35 = vld [vmem:[%s2941_s1 + $0x3a8] ss:$16 sps:$4 sm:$0xff]  }
  0x69   :  { %1420 = vmatpush1.bf16.msra.mxu0 %v2142_v57 }
  0x6a   :  { %1421 = vmatprep.subr.bf16.mxu0 %v2147_v59 }
  0x6b   :  { %936 = vmatpush1.bf16.msra.mxu1 %v2049_v36  ;;  %v2111_v36 = vld [vmem:[%s2941_s1 + $0x3cc] ss:$16 sps:$4 sm:$0xff]  }
  0x6c   :  { %937 = vmatprep.subr.bf16.mxu1 %v2054_v39  ;;  %v2112_v39 = vld [vmem:[%s2941_s1 + $0x3e8] ss:$16 sps:$4 sm:$0xff]  }
  0x6d   :  { %1422 = vmatpush1.bf16.msra.mxu0 %v2145_v61 }
  0x6e   :  { %1423 = vmatprep.subr.bf16.mxu0 %v2150_v0  ;;  %v2168_v0 = vld [vmem:[%s2943_s3 + $0x114] ss:$8 sps:$4 sm:$0xff]  }
  0x6f   :  { %938 = vmatpush1.bf16.msra.mxu1 %v2052_v41  ;;  %v2768_v41 = vshrl.u32 %v159_v40, 7  ;;  %v2210_v40 = vld [vmem:[%s2943_s3 + $0x1f4] ss:$8 sps:$4 sm:$0xff]  }
  0x70   :  { %939 = vmatprep.subr.bf16.mxu1 %v2057_v43  ;;  %v2774_v43 = vld [vmem:[%s2944_s2] sm:$0xf] }
  0x71   :  { %1424 = vmatpush1.bf16.msra.mxu0 %v2148_v1  ;;  %v161_v42 = vsub.s32 0, %v2768_v41  ;;  %v165_v44 = vsub.s32 1, %v2768_v41  ;;  %v2166_v1 = vld [vmem:[%s2943_s3 + $0x110] ss:$8 sps:$4 sm:$0xff]  }
  0x72   :  { %1425 = vmatprep.subr.bf16.mxu0 %v2153_v3  ;;  %v2171_v3 = vld [vmem:[%s2943_s3 + $0x124] ss:$8 sps:$4 sm:$0xff]  }
  0x73   :  { %940 = vmatpush1.bf16.msra.mxu1 %v2055_v45  ;;  %v162_v45 = vrot.slane %v2774_v43, %v161_v42 }
  0x74   :  { %941 = vmatprep.subr.bf16.mxu1 %v2060_v47 }
  0x77   :  { %942 = vmatpush1.bf16.msra.mxu1 %v2058_v49 }
  0x78   :  { %943 = vmatprep.subr.bf16.mxu1 %v2063_v51 }
  0x7b   :  { %944 = vmatpush1.bf16.msra.mxu1 %v2061_v54 }
  0x7c   :  { %945 = vmatprep.subr.bf16.mxu1 %v2066_v56 }
  0x7f   :  { %946 = vmatpush1.bf16.msra.mxu1 %v2064_v58 }
  0x80   :  { %956 = vmatprep.subr.bf16.mxu1 %v2069_v60 }
  0x82   :  { %948 = vmatmul.mubr.bf16.vlgmr.msra.gmra.mrb[4].mxu1 %v2471_v5  ;;  %v2151_v5 = vld [vmem:[%s2943_s3 + $0xc0] ss:$8 sps:$4 sm:$0xff]  }
  0x83   :  { %957 = vmatpush1.bf16.msra.mxu1 %v2067_v62  ;;  %988 = vmatprep.mubr.bf16.mxu1 %v2420_v52  ;;  %v2073_v52 = vld [vmem:[%s2941_s1 + $0x248] ss:$16 sps:$4 sm:$0xff]  }
  0x84   :  { %958 = vmatprep.subr.bf16.mxu1 %v2072_v63  ;;  %1426 = vmatpush1.bf16.msra.mxu0 %v2151_v5  ;;  %v2163_v63 = vld [vmem:[%s2943_s3 + $0x100] ss:$8 sps:$4 sm:$0xff]  }
  0x85   :  { %1427 = vmatprep.subr.bf16.mxu0 %v2156_v6  ;;  %v2213_v5 = vld [vmem:[%s2945_s5 + $0x48] sm:$0xff]   ;;  %v2215_v6 = vld [vmem:[%s2945_s5 + $0x50] sm:$0xff]  }
  0x87   :  { %959 = vmatpush1.bf16.msra.mxu1 %v2070_v2  ;;  %v2211_v2 = vld [vmem:[%s2945_s5 + $0x40] sm:$0xff]  }
  0x88   :  { %960 = vmatprep.subr.bf16.mxu1 %v2075_v4  ;;  %1428 = vmatpush1.bf16.msra.mxu0 %v2154_v9  ;;  %v2212_v4 = vld [vmem:[%s2945_s5] sm:$0xff]   ;;  %v2174_v9 = vld [vmem:[%s2943_s3 + $0x134] ss:$8 sps:$4 sm:$0xff]  }
  0x89   :  { %1429 = vmatprep.subr.bf16.mxu0 %v2159_v16  ;;  %v2219_v16 = vld [vmem:[%s2945_s5 + $0x60] sm:$0xff]  }
  0x8b   :  { %961 = vmatpush1.bf16.msra.mxu1 %v2073_v52  ;;  %v2214_v52 = vld [vmem:[%s2945_s5 + $0x8] sm:$0xff]  }
  0x8c   :  { %962 = vmatprep.subr.bf16.mxu1 %v2078_v8  ;;  %1430 = vmatpush1.bf16.msra.mxu0 %v2157_v18  ;;  %v2169_v8 = vld [vmem:[%s2943_s3 + $0x120] ss:$8 sps:$4 sm:$0xff]  }
  0x8d   :  { %1431 = vmatprep.subr.bf16.mxu0 %v2162_v20  ;;  %v2220_v18 = vld [vmem:[%s2945_s5 + $0x20] sm:$0xff]   ;;  %v2178_v20 = vld [vmem:[%s2943_s3 + $0x150] ss:$8 sps:$4 sm:$0xff]  }
  0x8f   :  { %963 = vmatpush1.bf16.msra.mxu1 %v2076_v10  ;;  %v2216_v10 = vld [vmem:[%s2945_s5 + $0x10] sm:$0xff]  }
  0x90   :  { %964 = vmatprep.subr.bf16.mxu1 %v2081_v11  ;;  %1432 = vmatpush1.bf16.msra.mxu0 %v2160_v22  ;;  %v2217_v11 = vld [vmem:[%s2945_s5 + $0x58] sm:$0xff]   ;;  %v2222_v22 = vld [vmem:[%s2945_s5 + $0x28] sm:$0xff]  }
  0x91   :  { %1442 = vmatprep.subr.bf16.mxu0 %v2165_v26  ;;  %v2189_v26 = vld [vmem:[%s2943_s3 + $0x184] ss:$8 sps:$4 sm:$0xff]  }
  0x93   :  { %965 = vmatpush1.bf16.msra.mxu1 %v2079_v12  ;;  %v2172_v12 = vld [vmem:[%s2943_s3 + $0x130] ss:$8 sps:$4 sm:$0xff]  }
  0x94   :  { %966 = vmatprep.subr.bf16.mxu1 %v2084_v13  ;;  %v2177_v13 = vld [vmem:[%s2943_s3 + $0x144] ss:$8 sps:$4 sm:$0xff]  }
  0x97   :  { %967 = vmatpush1.bf16.msra.mxu1 %v2082_v14  ;;  %v2218_v14 = vld [vmem:[%s2945_s5 + $0x18] sm:$0xff]  }
  0x98   :  { %968 = vmatprep.subr.bf16.mxu1 %v2087_v15  ;;  %v2175_v15 = vld [vmem:[%s2943_s3 + $0x140] ss:$8 sps:$4 sm:$0xff]  }
  0x9b   :  { %969 = vmatpush1.bf16.msra.mxu1 %v2085_v17  ;;  %v2180_v17 = vld [vmem:[%s2943_s3 + $0x154] ss:$8 sps:$4 sm:$0xff]  }
  0x9c   :  { %970 = vmatprep.subr.bf16.mxu1 %v2090_v19  ;;  %v2221_v19 = vld [vmem:[%s2945_s5 + $0x68] sm:$0xff]  }
  0x9f   :  { %971 = vmatpush1.bf16.msra.mxu1 %v2088_v21  ;;  %v2183_v21 = vld [vmem:[%s2943_s3 + $0x164] ss:$8 sps:$4 sm:$0xff]  }
  0xa0   :  { %972 = vmatprep.subr.bf16.mxu1 %v2093_v23  ;;  %v2181_v23 = vld [vmem:[%s2943_s3 + $0x160] ss:$8 sps:$4 sm:$0xff]  }
  0xa3   :  { %973 = vmatpush1.bf16.msra.mxu1 %v2091_v24  ;;  %v2186_v24 = vld [vmem:[%s2943_s3 + $0x174] ss:$8 sps:$4 sm:$0xff]  }
  0xa4   :  { %974 = vmatprep.subr.bf16.mxu1 %v2096_v25  ;;  %v2184_v25 = vld [vmem:[%s2943_s3 + $0x170] ss:$8 sps:$4 sm:$0xff]  }
  0xa7   :  { %975 = vmatpush1.bf16.msra.mxu1 %v2094_v27  ;;  %v2187_v27 = vld [vmem:[%s2943_s3 + $0x180] ss:$8 sps:$4 sm:$0xff]  }
  0xa8   :  { %976 = vmatprep.subr.bf16.mxu1 %v2099_v28  ;;  %v2192_v28 = vld [vmem:[%s2943_s3 + $0x194] ss:$8 sps:$4 sm:$0xff]  }
  0xab   :  { %977 = vmatpush1.bf16.msra.mxu1 %v2097_v29  ;;  %v2190_v29 = vld [vmem:[%s2943_s3 + $0x190] ss:$8 sps:$4 sm:$0xff]  }
  0xac   :  { %978 = vmatprep.subr.bf16.mxu1 %v2102_v30  ;;  %v2195_v30 = vld [vmem:[%s2943_s3 + $0x1a4] ss:$8 sps:$4 sm:$0xff]  }
  0xaf   :  { %979 = vmatpush1.bf16.msra.mxu1 %v2100_v31  ;;  %v2193_v31 = vld [vmem:[%s2943_s3 + $0x1a0] ss:$8 sps:$4 sm:$0xff]  }
  0xb0   :  { %980 = vmatprep.subr.bf16.mxu1 %v2105_v32  ;;  %v2198_v32 = vld [vmem:[%s2943_s3 + $0x1b4] ss:$8 sps:$4 sm:$0xff]  }
  0xb3   :  { %981 = vmatpush1.bf16.msra.mxu1 %v2103_v33  ;;  %v2196_v33 = vld [vmem:[%s2943_s3 + $0x1b0] ss:$8 sps:$4 sm:$0xff]  }
  0xb4   :  { %982 = vmatprep.subr.bf16.mxu1 %v2108_v34  ;;  %v2201_v34 = vld [vmem:[%s2943_s3 + $0x1c4] ss:$8 sps:$4 sm:$0xff]  }
  0xb7   :  { %983 = vmatpush1.bf16.msra.mxu1 %v2106_v35  ;;  %v2199_v35 = vld [vmem:[%s2943_s3 + $0x1c0] ss:$8 sps:$4 sm:$0xff]  }
  0xb8   :  { %984 = vmatprep.subr.bf16.mxu1 %v2111_v36  ;;  %v2204_v36 = vld [vmem:[%s2943_s3 + $0x1d4] ss:$8 sps:$4 sm:$0xff]  }
  0xbb   :  { %985 = vmatpush1.bf16.msra.mxu1 %v2109_v37  ;;  %v2202_v37 = vld [vmem:[%s2943_s3 + $0x1d0] ss:$8 sps:$4 sm:$0xff]  }
  0xbc   :  { %986 = vmatprep.subr.bf16.mxu1 %v2114_v38  ;;  %v2207_v38 = vld [vmem:[%s2943_s3 + $0x1e4] ss:$8 sps:$4 sm:$0xff]  }
  0xbf   :  { %987 = vmatpush1.bf16.msra.mxu1 %v2112_v39  ;;  %v2205_v39 = vld [vmem:[%s2943_s3 + $0x1e0] ss:$8 sps:$4 sm:$0xff]  }
  0xc0   :  { %1881 = vmatprep.subr.bf16.mxu1 %v2211_v2 }
  0xc2   :  { %989 = vmatmul.mubr.bf16.vlgmr.msra.gmra.mrb[4].mxu1 %v2476_v7  ;;  %v166_v7 = vrot.slane %v2774_v43, %v165_v44 }
  0xc3   :  { %1882 = vmatpush3.bf16.msra.mxu1 %v2212_v4 }
  0xc4   :  { %1883 = vmatprep.subr.bf16.mxu1 %v2213_v5 }
  0xc7   :  { %1884 = vmatpush3.bf16.msra.mxu1 %v2214_v52 }
  0xc8   :  { %1885 = vmatprep.subr.bf16.mxu1 %v2215_v6 }
  0xcb   :  { %1886 = vmatpush3.bf16.msra.mxu1 %v2216_v10 }
  0xcc   :  { %1887 = vmatprep.subr.bf16.mxu1 %v2217_v11 }
  0xcf   :  { %1888 = vmatpush3.bf16.msra.mxu1 %v2218_v14 }
  0xd0   :  { %1889 = vmatprep.subr.bf16.mxu1 %v2219_v16 }
  0xd3   :  { %1890 = vmatpush3.bf16.msra.mxu1 %v2220_v18 }
  0xd4   :  { %1891 = vmatprep.subr.bf16.mxu1 %v2221_v19 }
  0xd7   :  { %1892 = vmatpush3.bf16.msra.mxu1 %v2222_v22 }
 0x115   :  { %v867_v46 = vpop.f32.mrb[0].mxu1 }
 0x116   :  { %v868_v47 = vadd.f32 %v867_v46, %v162_v45  ;;  %v869_v48 = vpop.f32.mrb[1].mxu1  ;;  %v2208_v45 = vld [vmem:[%s2943_s3 + $0x1f0] ss:$8 sps:$4 sm:$0xff]   ;;  %v173_v46 = vsub.s32 3, %v2768_v41 }
 0x117   :  { %v870_v49 = vadd.f32 %v869_v48, %v166_v7  ;;  %v871_v50 = vpop.f32.mrb[2].mxu1  ;;  %v908_v51 = vpop.f32.mrb[0].mxu0  ;;  %v169_v7 = vsub.s32 2, %v2768_v41 }
 0x118   :  { %v909_v53 = vadd.f32 %v908_v51, %v868_v47  ;;  %v872_v54 = vpop.f32.mrb[3].mxu1  ;;  %v910_v55 = vpop.f32.mrb[1].mxu0  ;;  %v174_v48 = vrot.slane %v2774_v43, %v173_v46 }
 0x119   :  { %v911_v56 = vadd.f32 %v910_v55, %v870_v49  ;;  %v912_v57 = vpop.f32.mrb[2].mxu0  ;;  %v170_v47 = vrot.slane %v2774_v43, %v169_v7  ;;  %v2224_v43 = vld [vmem:[%s2945_s5 + $0x30] sm:$0xff]  }
 0x11a   :  { %v997_v58 = vmax.f32 %v909_v53, 0.0  ;;  %v913_v59 = vpop.f32.mrb[3].mxu0 }
 0x11b   :  { %v998_v60 = vmax.f32 %v911_v56, 0.0 }
 0x11c   :  { %v1001_v61 = vpack.c.bf16 %v997_v58, %v997_v58 }
 0x11d   :  { %v1002_v62 = vpack.c.bf16 %v998_v60, %v998_v60  ;;  %v2223_v60 = vld [vmem:[%s2945_s5 + $0x70] sm:$0xff]  }
 0x11e   :  { %1893 = vmatprep.subr.bf16.mxu1 %v2223_v60 }
 0x11f   :  { %1433 = vmatprep.mubr.bf16.mxu0 %v1002_v62  ;;  %1894 = vmatpush3.bf16.msra.mxu1 %v2224_v43  ;;  %v2226_v62 = vld [vmem:[%s2945_s5 + $0x38] sm:$0xff]  }
 0x120   :  { %1434 = vmatmul.mubr.bf16.vlgmr.msra.gmra.mrb[4].mxu0 %v1001_v61  ;;  %v2225_v61 = vld [vmem:[%s2945_s5 + $0x78] sm:$0xff]  }
 0x121   :  { %1443 = vmatpush1.bf16.msra.mxu0 %v2163_v63  ;;  %1895 = vmatprep.subr.bf16.mxu1 %v2225_v61  ;;  %v1069_v63 = vld [vmem:[%s2946_s4] sm:$0x3] }
 0x122   :  { %1444 = vmatprep.subr.bf16.mxu0 %v2168_v0  ;;  %v1074_v0 = vrot.slane %v1069_v63, %v161_v42  ;;  %v1864_v42 = vld [vmem:[%s2947_s6] ss:$0 sm:$0xff] }
 0x123   :  { %1896 = vmatpush3.bf16.msra.mxu1 %v2226_v62 }
 0x125   :  { %1445 = vmatpush1.bf16.msra.mxu0 %v2166_v1  ;;  %v1078_v1 = vrot.slane %v1069_v63, %v165_v44 }
 0x126   :  { %1446 = vmatprep.subr.bf16.mxu0 %v2171_v3 }
 0x129   :  { %1447 = vmatpush1.bf16.msra.mxu0 %v2169_v8 }
 0x12a   :  { %1448 = vmatprep.subr.bf16.mxu0 %v2174_v9 }
 0x12d   :  { %1449 = vmatpush1.bf16.msra.mxu0 %v2172_v12 }
 0x12e   :  { %1450 = vmatprep.subr.bf16.mxu0 %v2177_v13 }
 0x131   :  { %1451 = vmatpush1.bf16.msra.mxu0 %v2175_v15 }
 0x132   :  { %1452 = vmatprep.subr.bf16.mxu0 %v2180_v17 }
 0x135   :  { %1453 = vmatpush1.bf16.msra.mxu0 %v2178_v20 }
 0x136   :  { %1454 = vmatprep.subr.bf16.mxu0 %v2183_v21 }
 0x139   :  { %1455 = vmatpush1.bf16.msra.mxu0 %v2181_v23 }
 0x13a   :  { %1456 = vmatprep.subr.bf16.mxu0 %v2186_v24 }
 0x13d   :  { %1457 = vmatpush1.bf16.msra.mxu0 %v2184_v25 }
 0x13e   :  { %1458 = vmatprep.subr.bf16.mxu0 %v2189_v26 }
 0x141   :  { %1459 = vmatpush1.bf16.msra.mxu0 %v2187_v27 }
 0x142   :  { %1460 = vmatprep.subr.bf16.mxu0 %v2192_v28 }
 0x145   :  { %1461 = vmatpush1.bf16.msra.mxu0 %v2190_v29 }
 0x146   :  { %1462 = vmatprep.subr.bf16.mxu0 %v2195_v30 }
 0x149   :  { %1463 = vmatpush1.bf16.msra.mxu0 %v2193_v31 }
 0x14a   :  { %1464 = vmatprep.subr.bf16.mxu0 %v2198_v32 }
 0x14d   :  { %1465 = vmatpush1.bf16.msra.mxu0 %v2196_v33 }
 0x14e   :  { %1466 = vmatprep.subr.bf16.mxu0 %v2201_v34 }
 0x151   :  { %1467 = vmatpush1.bf16.msra.mxu0 %v2199_v35 }
 0x152   :  { %1468 = vmatprep.subr.bf16.mxu0 %v2204_v36 }
 0x155   :  { %1469 = vmatpush1.bf16.msra.mxu0 %v2202_v37 }
 0x156   :  { %1470 = vmatprep.subr.bf16.mxu0 %v2207_v38 }
 0x159   :  { %1471 = vmatpush1.bf16.msra.mxu0 %v2205_v39 }
 0x15a   :  { %1472 = vmatprep.subr.bf16.mxu0 %v2210_v40 }
 0x15d   :  { %1473 = vmatpush1.bf16.msra.mxu0 %v2208_v45 }
 0x195   :  { %v990_v49 = vpop.f32.mrb[4].mxu1 }
 0x196   :  { %v1907_v50 = vadd.f32 %v990_v49, %v170_v47  ;;  %v992_v51 = vpop.f32.mrb[5].mxu1 }
 0x197   :  { %v1908_v53 = vadd.f32 %v992_v51, %v174_v48  ;;  %v994_v54 = vpop.f32.mrb[6].mxu1 }
 0x198   :  { %v999_v55 = vmax.f32 %v1907_v50, 0.0  ;;  %v995_v56 = vpop.f32.mrb[7].mxu1 }
 0x199   :  { %v1000_v57 = vmax.f32 %v1908_v53, 0.0 }
 0x19a   :  { %v1003_v59 = vpack.c.bf16 %v999_v55, %v999_v55 }
 0x19b   :  { %v1004_v58 = vpack.c.bf16 %v1000_v57, %v1000_v57 }
 0x19d   :  { %1474 = vmatprep.mubr.bf16.mxu0 %v1004_v58 }
 0x19e   :  { %1475 = vmatmul.mubr.bf16.vlgmr.msra.gmra.mrb[4].mxu0 %v1003_v59 }
 0x271   :  { %v1476_v2 = vpop.f32.mrb[4].mxu0 }
 0x272   :  { %v1909_v3 = vadd.f32 %v1476_v2, %v1074_v0  ;;  %v1478_v4 = vpop.f32.mrb[5].mxu0 }
 0x273   :  { %v1910_v5 = vadd.f32 %v1478_v4, %v1078_v1  ;;  %v1480_v52 = vpop.f32.mrb[6].mxu0 }
 0x274   :  { %v1483_v6 = vmax.f32 %v1909_v3, 0.0  ;;  %v1481_v8 = vpop.f32.mrb[7].mxu0 }
 0x275   :  { %v1484_v9 = vmax.f32 %v1910_v5, 0.0 }
 0x276   :  { %v1485_v11 = vpack.c.bf16 %v1483_v6, %v1483_v6 }
 0x277   :  { %v1486_v10 = vpack.c.bf16 %v1484_v9, %v1484_v9 }
 0x279   :  { %1654 = vmatprep.mubr.bf16.mxu1 %v1486_v10 }
 0x27a   :  { %1655 = vmatmul.mubr.bf16.vlgmr.msra.gmra.mrb[8].mxu1 %v1485_v11 }
 0x34d   :  { %v1897_v12 = vpop.f32.mrb[8].mxu1 }
 0x34e   :  { %v1898_v13 = vpop.f32.mrb[9].mxu1 }
 0x34f   :  { %v1899_v41 = vadd.f32 %v1898_v13, %v1897_v12  ;;  %v1900_v44 = vpop.f32.mrb[10].mxu1 }
 0x350   :  { %v1901_v14 = vpop.f32.mrb[11].mxu1 }
 0x351   :  { %v1657_v15 = vadd.f32 %v1899_v41, %v1864_v42 }
 0x353   :  { %1663 = vst.msk [vmem:[%s2948_s7] sm:$0xff] %vm1662_vm0, %v1657_v15 }

</bundles_post_ra>
